<compile_context>
chip_gen: v6e
topology: v6e:2x2x1
jax: 0.10.0
libtpu: 0.0.40
codegen_flags: <defaults>
</compile_context>

<pallas_src>
import functools

import jax
import jax.numpy as jnp
from jax import lax
from jax.experimental import pallas as pl
from jax.experimental.pallas import tpu as pltpu


def attloc_kernel(scaling, tanh_bf16,
                  enc_ref,    # (BB, T, D_aug)  bf16  [enc | att_prev windows | 0]
                  dec_ref,    # (BB, 1, A)      f32   mlp_dec(dec_h) + folded biases
                  len_ref,    # (BB, 1)         int32
                  w_aug_ref,  # (D_aug, A)      bf16  [w_enc ; conv_w @ w_att ; 0]
                  w_g_ref,    # (1, A)          f32
                  w_o_ref,    # (D_aug, O)      f32   zero rows beyond D_enc
                  b_o_ref,    # (1, O)          f32
                  c_ref,      # out (BB, O)     f32
                  attn_ref):  # out (BB, T)     f32
    BB, T, D_aug = enc_ref.shape
    A = w_aug_ref.shape[1]
    f32 = jnp.float32

    enc = enc_ref[...]                                            # (BB, T, D_aug) bf16

    # --- one big MXU matmul over the whole batch block: M = BB*T rows ---
    s = jnp.dot(enc.reshape(BB * T, D_aug), w_aug_ref[...],
                preferred_element_type=f32)                       # (BB*T, A) f32
    s = s.reshape(BB, T, A) + dec_ref[...]                        # + dec proj / biases

    # tanh: bf16 on v6e/v7x (EUP), f32 otherwise
    if tanh_bf16:
        att = jnp.tanh(s.astype(jnp.bfloat16)).astype(f32)
    else:
        att = jnp.tanh(s)                                         # (BB, T, A) f32

    # energy: one VPU multiply + lane reduce, lands lane-dense as (BB, T)
    e = jnp.sum(att * w_g_ref[...], axis=-1)                      # (BB, T) f32

    # length mask (masked_fill with -1e15): one vectorized compare/select
    t_idx = lax.broadcasted_iota(jnp.int32, (BB, T), 1)
    e = jnp.where(t_idx < len_ref[...], e, f32(-1e15))

    # softmax(scaling * e) along T -- f32, lane-dense
    z = f32(scaling) * e
    z = z - jnp.max(z, axis=-1, keepdims=True)
    p = jnp.exp(z)
    attn = p / jnp.sum(p, axis=-1, keepdims=True)                 # (BB, T)
    attn_ref[...] = attn

    # context: broadcast-multiply + reduce over T (VPU/XLU), f32 accumulate.
    # Lanes beyond D_enc (windows / zero pad) are killed by w_o's zero rows.
    ctx = jnp.sum(enc.astype(f32) * attn[:, :, None], axis=1)     # (BB, D_aug)

    # output projection for the whole block in one MXU tile
    c_ref[...] = (jnp.dot(ctx, w_o_ref[...],
                          preferred_element_type=f32) + b_o_ref[...])


def attloc_forward(params, enc_pad, enc_len, dec_h, att_prev, scaling=2.0,
                   block_b=8):
    B, T, D_enc = enc_pad.shape
    A = params["w_enc"].shape[1]
    O = params["w_o"].shape[1]
    KW = params["conv_w"].shape[0]
    K = (KW - 1) // 2
    f32, bf16 = jnp.float32, jnp.bfloat16

    rup = lambda x, m: ((x + m - 1) // m) * m
    T_pad = rup(T, 16)                    # bf16 sublane tile -> clean flatten reshape
    A_pad = rup(A, 128)                   # lane-dense MXU tiles
    D_aug = rup(D_enc + KW, 128)          # augmented (enc | conv windows) contraction

    # ---- generation-aware sizing (v7x has only 64 MiB VMEM, 2 TCs) ----
    try:
        vmem_cap = int(pltpu.get_tpu_info().vmem_capacity_bytes)
    except Exception:
        vmem_cap = 64 * 1024 * 1024
    try:
        kind = jax.devices()[0].device_kind.lower()
    except Exception:
        kind = ""
    tanh_bf16 = any(tag in kind for tag in ("v6", "v7", "7x"))

    def vmem_estimate(bb):
        blk_in = bb * T_pad * D_aug * 2 + bb * A_pad * 4 + bb * 4
        blk_out = bb * (O + T_pad) * 4
        weights = D_aug * A_pad * 2 + A_pad * 4 + D_aug * O * 4 + O * 4
        temps = (bb * T_pad * A_pad * 4 * 2        # s, att (f32)
                 + bb * T_pad * D_aug * 4 * 2      # enc f32 + product
                 + bb * T_pad * 4 * 4              # e/z/p/attn
                 + bb * D_aug * 4)                 # ctx
        return 2 * (blk_in + blk_out) + 2 * weights + temps

    BB = max(8, rup(block_b, 8))
    budget = int(0.70 * vmem_cap)
    while BB > 8 and vmem_estimate(BB) > budget:
        BB -= 8
    # prefer >= 2 grid steps (megacore split on v7x) when the batch allows it
    while BB > 8 and pl.cdiv(B, BB) < 2:
        BB -= 8
    B_pad = rup(B, BB)
    n_blocks = B_pad // BB
    est = vmem_estimate(BB)
    vmem_limit = int(min(max(int(1.5 * est) + (8 << 20), 32 << 20),
                         int(0.9 * vmem_cap)))

    # ---- wrapper-side hoisted projections & layout glue (cheap XLA ops) ----
    # decoder projection hoisted; all additive biases folded into it
    dec_proj = (dec_h.reshape(B, -1).astype(f32) @ params["w_dec"].astype(f32)
                + params["b_dec"] + params["b_enc"] + params["b_att"])       # (B, A)
    # fuse the location conv into mlp_att: win @ (conv_w @ w_att)
    fused = params["conv_w"].astype(f32) @ params["w_att"].astype(f32)       # (KW, A)
    # "same"-padded sliding windows of att_prev as shifted rows
    ap = jnp.pad(att_prev.astype(f32), ((0, 0), (K, K)))
    win = jnp.stack([ap[:, j:j + T] for j in range(KW)], axis=-1)            # (B, T, KW)

    # augmented encoder: the ONLY materialized copy of enc, bf16 end-to-end
    enc_aug = jnp.concatenate(
        [enc_pad.astype(bf16), win.astype(bf16),
         jnp.zeros((B, T, D_aug - D_enc - KW), bf16)], axis=-1)              # (B, T, D_aug)
    if B_pad != B or T_pad != T:
        enc_aug = jnp.pad(enc_aug, ((0, B_pad - B), (0, T_pad - T), (0, 0)))

    # augmented weights, zero-padded to (D_aug, A_pad)
    w_aug = jnp.zeros((D_aug, A_pad), f32)
    w_aug = w_aug.at[:D_enc, :A].set(params["w_enc"].astype(f32))
    w_aug = w_aug.at[D_enc:D_enc + KW, :A].set(fused)
    w_aug = w_aug.astype(bf16)

    dec_b = jnp.zeros((B_pad, 1, A_pad), f32).at[:B, 0, :A].set(dec_proj)
    len_b = jnp.zeros((B_pad, 1), jnp.int32).at[:B, 0].set(enc_len.astype(jnp.int32))
    w_g_row = jnp.zeros((1, A_pad), f32).at[0, :A].set(params["w_g"][:, 0].astype(f32))
    w_o_aug = jnp.zeros((D_aug, O), f32).at[:D_enc, :].set(params["w_o"].astype(f32))
    b_o = params["b_o"].reshape(1, O).astype(f32)

    full2 = lambda i: (0, 0)
    grid_spec = pltpu.PrefetchScalarGridSpec(
        num_scalar_prefetch=0,
        grid=(n_blocks,),
        in_specs=[
            pl.BlockSpec((BB, T_pad, D_aug), lambda i: (i, 0, 0)),   # enc_aug (bf16)
            pl.BlockSpec((BB, 1, A_pad), lambda i: (i, 0, 0)),       # dec proj + biases
            pl.BlockSpec((BB, 1), lambda i: (i, 0)),                 # enc_len
            pl.BlockSpec((D_aug, A_pad), full2),                     # w_aug (bf16)
            pl.BlockSpec((1, A_pad), full2),                         # gvec row
            pl.BlockSpec((D_aug, O), full2),                         # w_o (zero-padded rows)
            pl.BlockSpec((1, O), full2),                             # b_o
        ],
        out_specs=[
            pl.BlockSpec((BB, O), lambda i: (i, 0)),                 # c
            pl.BlockSpec((BB, T_pad), lambda i: (i, 0)),             # attn (lane-dense)
        ],
    )

    c_p, attn_p = pl.pallas_call(
        functools.partial(attloc_kernel, float(scaling), tanh_bf16),
        grid_spec=grid_spec,
        out_shape=(jax.ShapeDtypeStruct((B_pad, O), f32),
                   jax.ShapeDtypeStruct((B_pad, T_pad), f32)),
        compiler_params=pltpu.CompilerParams(
            dimension_semantics=("parallel",),
            vmem_limit_bytes=vmem_limit),
    )(enc_aug, dec_b, len_b, w_aug, w_g_row, w_o_aug, b_o)

    # padded batch rows / time columns carry junk by construction; slice them off
    return c_p[:B], attn_p[:B, :T]


def attloc_reference(params, enc_pad, enc_len, dec_h, att_prev, scaling=2.0):
    """Pure-JAX f32 reference replicating the PyTorch forward."""
    B, T, _ = enc_pad.shape
    K = (params["conv_w"].shape[0] - 1) // 2
    enc_h = enc_pad @ params["w_enc"] + params["b_enc"]                 # (B,T,A)
    dec2 = dec_h.reshape(B, -1) @ params["w_dec"] + params["b_dec"]     # (B,A)
    ap_pad = jnp.pad(att_prev, ((0, 0), (K, K)))
    windows = jnp.stack([ap_pad[:, j:j + T] for j in range(2 * K + 1)], axis=2)
    conv_out = windows @ params["conv_w"]                               # (B,T,C)
    att_conv = conv_out @ params["w_att"] + params["b_att"]             # (B,T,A)
    att_state = jnp.tanh(enc_h + dec2[:, None, :] + att_conv)
    e = (att_state @ params["w_g"])[..., 0]                             # (B,T)
    t_idx = jnp.arange(T)[None, :]
    e = jnp.where(t_idx < enc_len[:, None], e, -1e15)
    attn = jax.nn.softmax(scaling * e, axis=1)
    c = jnp.einsum("bt,btd->bd", attn, enc_pad)
    c = c @ params["w_o"] + params["b_o"]
    return c, attn


if __name__ == "__main__":
    B, T = 2, 8
    encoder_dim, decoder_dim, att_dim = 32, 16, 32
    conv_channels, conv_kernel_size, att_odim = 4, 2, 24
    K = conv_kernel_size

    key = jax.random.PRNGKey(0)
    ks = jax.random.split(key, 12)

    def u(k, shape, scale=0.1):
        return jax.random.uniform(k, shape, jnp.float32, -scale, scale)

    # Deterministic synthetic parameters (Linear weights stored as (in, out)).
    params = {
        "w_enc": u(ks[0], (encoder_dim, att_dim)),
        "b_enc": u(ks[1], (1, att_dim)),
        "w_dec": u(ks[2], (decoder_dim, att_dim)),
        "b_dec": u(ks[3], (1, att_dim)),
        "conv_w": u(ks[4], (2 * K + 1, conv_channels)),  # conv_w[j,c] = W_torch[c,0,0,j]
        "w_att": u(ks[5], (conv_channels, att_dim)),
        "b_att": u(ks[6], (1, att_dim)),
        "w_g": u(ks[7], (att_dim, 1)),
        "w_o": u(ks[8], (encoder_dim, att_odim)),
        "b_o": u(ks[9], (1, att_odim)),
    }

    enc_pad = jax.random.normal(ks[10], (B, T, encoder_dim), jnp.float32)
    dec_h = jax.random.normal(ks[11], (B, 1, decoder_dim), jnp.float32)
    enc_len = jnp.array([T, 5], dtype=jnp.int32)
    t_idx = jnp.arange(T)[None, :]
    att_prev = jnp.where(t_idx < enc_len[:, None],
                         1.0 / enc_len[:, None].astype(jnp.float32), 0.0)

    c, attn = attloc_forward(params, enc_pad, enc_len, dec_h, att_prev, scaling=2.0)
    jax.block_until_ready((c, attn))

    c_ref, attn_ref = attloc_reference(params, enc_pad, enc_len, dec_h, att_prev,
                                       scaling=2.0)
    # bf16 MXU path (enc/windows/w_aug in bfloat16, f32 accumulation) -> use
    # tolerances appropriate for bfloat16 inputs against the f32 reference.
    assert c.shape == (B, att_odim) and attn.shape == (B, T)
    assert jnp.allclose(c, c_ref, atol=2e-2, rtol=2e-2), "context mismatch"
    assert jnp.allclose(attn, attn_ref, atol=2e-2, rtol=2e-2), "attn mismatch"
    print("KERNEL_OK")
</pallas_src>

<mosaic_0001>
module attributes {stable_mosaic.version = 11 : i64} {
  func.func @attloc_kernel(%arg0: i32, %arg1: memref<8x16x128xbf16, #tpu.memory_space<vmem>>, %arg2: memref<8x1x128xf32, #tpu.memory_space<vmem>>, %arg3: memref<8x1xi32, #tpu.memory_space<vmem>>, %arg4: memref<128x128xbf16, #tpu.memory_space<vmem>>, %arg5: memref<1x128xf32, #tpu.memory_space<vmem>>, %arg6: memref<128x24xf32, #tpu.memory_space<vmem>>, %arg7: memref<1x24xf32, #tpu.memory_space<vmem>>, %arg8: memref<8x24xf32, #tpu.memory_space<vmem>>, %arg9: memref<8x16xf32, #tpu.memory_space<vmem>>) attributes {dimension_semantics = [#tpu.dimension_semantics<parallel>], iteration_bounds = array<i64: 1>, scalar_prefetch = 0 : i64, scratch_operands = 0 : i64, tpu.core_type = #tpu.core_type<tc>, window_params = [{transform_indices = @transform_0, window_bounds = array<i64: 8, 16, 128>}, {transform_indices = @transform_1, window_bounds = array<i64: 8, 1, 128>}, {transform_indices = @transform_2, window_bounds = array<i64: 8, 1>}, {pipeline_mode = #tpu.pipeline_mode<synchronous>, transform_indices = @transform_3, window_bounds = array<i64: 128, 128>}, {pipeline_mode = #tpu.pipeline_mode<synchronous>, transform_indices = @transform_4, window_bounds = array<i64: 1, 128>}, {pipeline_mode = #tpu.pipeline_mode<synchronous>, transform_indices = @transform_5, window_bounds = array<i64: 128, 24>}, {pipeline_mode = #tpu.pipeline_mode<synchronous>, transform_indices = @transform_6, window_bounds = array<i64: 1, 24>}, {transform_indices = @transform_7, window_bounds = array<i64: 8, 24>}, {transform_indices = @transform_8, window_bounds = array<i64: 8, 16>}]} {
    %c0 = arith.constant 0 : index
    %c0_0 = arith.constant 0 : index
    %c0_1 = arith.constant 0 : index
    %0 = vector.load %arg1[%c0, %c0_0, %c0_1] : memref<8x16x128xbf16, #tpu.memory_space<vmem>>, vector<8x16x128xbf16>
    %1 = vector.shape_cast %0 : vector<8x16x128xbf16> to vector<128x128xbf16>
    %c0_2 = arith.constant 0 : index
    %c0_3 = arith.constant 0 : index
    %2 = vector.load %arg4[%c0_2, %c0_3] : memref<128x128xbf16, #tpu.memory_space<vmem>>, vector<128x128xbf16>
    %cst = arith.constant dense<0.000000e+00> : vector<128x128xf32>
    %3 = tpu.matmul %1, %2, %cst {dimension_numbers = #tpu.dot_dimension_numbers<[1], [0], [0], [1], [0, 0, 1, 1], [], []>} : vector<128x128xbf16>, vector<128x128xbf16>, vector<128x128xf32> -> vector<128x128xf32>
    %4 = vector.shape_cast %3 : vector<128x128xf32> to vector<8x16x128xf32>
    %c0_4 = arith.constant 0 : index
    %c0_5 = arith.constant 0 : index
    %c0_6 = arith.constant 0 : index
    %5 = vector.load %arg2[%c0_4, %c0_5, %c0_6] : memref<8x1x128xf32, #tpu.memory_space<vmem>>, vector<8x1x128xf32>
    %6 = vector.broadcast %5 : vector<8x1x128xf32> to vector<8x16x128xf32>
    %7 = arith.addf %4, %6 : vector<8x16x128xf32>
    %8 = math.tanh %7 : vector<8x16x128xf32>
    %c0_7 = arith.constant 0 : index
    %c0_8 = arith.constant 0 : index
    %9 = vector.load %arg5[%c0_7, %c0_8] : memref<1x128xf32, #tpu.memory_space<vmem>>, vector<1x128xf32>
    %10 = vector.shape_cast %9 : vector<1x128xf32> to vector<1x1x128xf32>
    %11 = vector.broadcast %10 : vector<1x1x128xf32> to vector<8x16x128xf32>
    %12 = arith.mulf %8, %11 : vector<8x16x128xf32>
    %cst_9 = arith.constant dense<0.000000e+00> : vector<8x16xf32>
    %13 = vector.multi_reduction <add>, %12, %cst_9 [2] : vector<8x16x128xf32> to vector<8x16xf32>
    %14 = tpu.iota {dimensions = array<i32: 1>} : vector<8x16xi32>
    %c0_10 = arith.constant 0 : index
    %c0_11 = arith.constant 0 : index
    %15 = vector.load %arg3[%c0_10, %c0_11] : memref<8x1xi32, #tpu.memory_space<vmem>>, vector<8x1xi32>
    %16 = vector.broadcast %15 : vector<8x1xi32> to vector<8x16xi32>
    %17 = arith.cmpi slt, %14, %16 : vector<8x16xi32>
    %cst_12 = arith.constant -9.99999986E+14 : f32
    %18 = vector.broadcast %cst_12 : f32 to vector<8x16xf32>
    %19 = arith.select %17, %13, %18 : vector<8x16xi1>, vector<8x16xf32>
    %cst_13 = arith.constant 2.000000e+00 : f32
    %20 = vector.broadcast %cst_13 : f32 to vector<8x16xf32>
    %21 = arith.mulf %20, %19 : vector<8x16xf32>
    %cst_14 = arith.constant dense<0xFF800000> : vector<8xf32>
    %22 = vector.multi_reduction <maximumf>, %21, %cst_14 [1] : vector<8x16xf32> to vector<8xf32>
    %23 = vector.shape_cast %22 : vector<8xf32> to vector<8x1xf32>
    %24 = vector.broadcast %23 : vector<8x1xf32> to vector<8x16xf32>
    %25 = arith.subf %21, %24 : vector<8x16xf32>
    %26 = math.exp %25 : vector<8x16xf32>
    %cst_15 = arith.constant dense<0.000000e+00> : vector<8xf32>
    %27 = vector.multi_reduction <add>, %26, %cst_15 [1] : vector<8x16xf32> to vector<8xf32>
    %28 = vector.shape_cast %27 : vector<8xf32> to vector<8x1xf32>
    %29 = vector.broadcast %28 : vector<8x1xf32> to vector<8x16xf32>
    %30 = arith.divf %26, %29 : vector<8x16xf32>
    %c0_16 = arith.constant 0 : index
    %c0_17 = arith.constant 0 : index
    %31 = vector.load %arg9[%c0_16, %c0_17] : memref<8x16xf32, #tpu.memory_space<vmem>>, vector<8x16xf32>
    tpu.vector_store %arg9[%c0_16, %c0_17], %30 {strides = array<i32>} : memref<8x16xf32, #tpu.memory_space<vmem>>, vector<8x16xf32>,
    %32 = arith.extf %0 : vector<8x16x128xbf16> to vector<8x16x128xf32>
    %33 = vector.shape_cast %30 : vector<8x16xf32> to vector<8x16x1xf32>
    %34 = vector.broadcast %33 : vector<8x16x1xf32> to vector<8x16x128xf32>
    %35 = arith.mulf %32, %34 : vector<8x16x128xf32>
    %cst_18 = arith.constant dense<0.000000e+00> : vector<8x128xf32>
    %36 = vector.multi_reduction <add>, %35, %cst_18 [1] : vector<8x16x128xf32> to vector<8x128xf32>
    %c0_19 = arith.constant 0 : index
    %c0_20 = arith.constant 0 : index
    %37 = vector.load %arg6[%c0_19, %c0_20] : memref<128x24xf32, #tpu.memory_space<vmem>>, vector<128x24xf32>
    %cst_21 = arith.constant dense<0.000000e+00> : vector<8x24xf32>
    %38 = tpu.matmul %36, %37, %cst_21 {dimension_numbers = #tpu.dot_dimension_numbers<[1], [0], [0], [1], [0, 0, 1, 1], [], []>} : vector<8x128xf32>, vector<128x24xf32>, vector<8x24xf32> -> vector<8x24xf32>
    %c0_22 = arith.constant 0 : index
    %c0_23 = arith.constant 0 : index
    %39 = vector.load %arg7[%c0_22, %c0_23] : memref<1x24xf32, #tpu.memory_space<vmem>>, vector<1x24xf32>
    %40 = vector.broadcast %39 : vector<1x24xf32> to vector<8x24xf32>
    %41 = arith.addf %38, %40 : vector<8x24xf32>
    %c0_24 = arith.constant 0 : index
    %c0_25 = arith.constant 0 : index
    %42 = vector.load %arg8[%c0_24, %c0_25] : memref<8x24xf32, #tpu.memory_space<vmem>>, vector<8x24xf32>
    tpu.vector_store %arg8[%c0_24, %c0_25], %41 {strides = array<i32>} : memref<8x24xf32, #tpu.memory_space<vmem>>, vector<8x24xf32>,
    return
  }
  func.func @transform_0(%arg0: i32) -> (i32, i32, i32) {
    %c0_i32 = arith.constant 0 : i32
    %c0_i32_0 = arith.constant 0 : i32
    %c0_i32_1 = arith.constant 0 : i32
    return %arg0, %c0_i32, %c0_i32_0 : i32, i32, i32
  }
  func.func @transform_1(%arg0: i32) -> (i32, i32, i32) {
    %c0_i32 = arith.constant 0 : i32
    %c0_i32_0 = arith.constant 0 : i32
    %c0_i32_1 = arith.constant 0 : i32
    return %arg0, %c0_i32, %c0_i32_0 : i32, i32, i32
  }
  func.func @transform_2(%arg0: i32) -> (i32, i32) {
    %c0_i32 = arith.constant 0 : i32
    %c0_i32_0 = arith.constant 0 : i32
    return %arg0, %c0_i32 : i32, i32
  }
  func.func @transform_3(%arg0: i32) -> (i32, i32) {
    %c0_i32 = arith.constant 0 : i32
    %c0_i32_0 = arith.constant 0 : i32
    %c0_i32_1 = arith.constant 0 : i32
    return %c0_i32, %c0_i32_0 : i32, i32
  }
  func.func @transform_4(%arg0: i32) -> (i32, i32) {
    %c0_i32 = arith.constant 0 : i32
    %c0_i32_0 = arith.constant 0 : i32
    %c0_i32_1 = arith.constant 0 : i32
    return %c0_i32, %c0_i32_0 : i32, i32
  }
  func.func @transform_5(%arg0: i32) -> (i32, i32) {
    %c0_i32 = arith.constant 0 : i32
    %c0_i32_0 = arith.constant 0 : i32
    %c0_i32_1 = arith.constant 0 : i32
    return %c0_i32, %c0_i32_0 : i32, i32
  }
  func.func @transform_6(%arg0: i32) -> (i32, i32) {
    %c0_i32 = arith.constant 0 : i32
    %c0_i32_0 = arith.constant 0 : i32
    %c0_i32_1 = arith.constant 0 : i32
    return %c0_i32, %c0_i32_0 : i32, i32
  }
  func.func @transform_7(%arg0: i32) -> (i32, i32) {
    %c0_i32 = arith.constant 0 : i32
    %c0_i32_0 = arith.constant 0 : i32
    return %arg0, %c0_i32 : i32, i32
  }
  func.func @transform_8(%arg0: i32) -> (i32, i32) {
    %c0_i32 = arith.constant 0 : i32
    %c0_i32_0 = arith.constant 0 : i32
    return %arg0, %c0_i32 : i32, i32
  }
}

</mosaic_0001>

<bundles_post_ra>
// kernel: tpu_custom_call.1
= control target key start
LH: loop header
LB: loop body
LE: loop exit
PB: predicated region body
PF: predicated region fallthrough
CT: control target
= control target key end

     0   :  { %14 = vsyncpa [#allocation3], 0  ;;  %s1357_s0 = inlined_call_operand.vmem [shape: bf16[8,16,128], index: 0, kind: input, shape index: {}]   ;;  %s1358_s1 = inlined_call_operand.vmem [shape: f32[8,1,128], index: 1, kind: input, shape index: {}]   ;;  %s1359_s2 = inlined_call_operand.vmem [shape: s32[8,1], index: 2, kind: input, shape index: {}]   ;;  %s1360_s3 = inlined_call_operand.vmem [shape: bf16[128,128], index: 3, kind: input, shape index: {}]   ;;  %s1361_s4 = inlined_call_operand.vmem [shape: f32[1,128], index: 4, kind: input, shape index: {}]   ;;  %s1362_s5 = inlined_call_operand.vmem [shape: f32[128,24], index: 5, kind: input, shape index: {}]   ;;  %s1363_s6 = inlined_call_operand.vmem [shape: f32[1,24], index: 6, kind: input, shape index: {}]   ;;  %s1364_s7 = inlined_call_operand.hbm [shape: f32[8,24], index: 7, kind: output, shape index: {0}]   ;;  %s1365_s8 = inlined_call_operand.hbm [shape: f32[8,16], index: 8, kind: output, shape index: {1}]  }
   0x1   :  { %v973_v0 = vld [vmem:[%s1360_s3 + $0x38] sm:$0xff]   ;;  %v974_v1 = vld [vmem:[%s1360_s3 + $0x30] sm:$0xff]   ;;  %v975_v2 = vld [vmem:[%s1360_s3 + $0x28] sm:$0xff]  }
   0x2   :  { %900 = vmatprep.subr.bf16.mxu0 %v973_v0  ;;  %v976_v3 = vld [vmem:[%s1360_s3 + $0x20] sm:$0xff]  }
   0x3   :  { %901 = vmatpush3.bf16.msra.mxu0 %v973_v0  ;;  %v1142_v4 = vld [vmem:[%s1357_s0] sm:$0xff]  }
   0x4   :  { %902 = vmatprep.subr.bf16.mxu0 %v974_v1 }
   0x7   :  { %903 = vmatpush3.bf16.msra.mxu0 %v974_v1 }
   0x8   :  { %904 = vmatprep.subr.bf16.mxu0 %v975_v2 }
   0x9   :  { %15 = vsyncpa [#allocation5], 0  ;;  %916 = vmatprep.mubr.bf16.mxu0 %v1142_v4  ;;  %v977_v5 = vld [vmem:[%s1360_s3 + $0x18] sm:$0xff]   ;;  %v978_v6 = vld [vmem:[%s1360_s3 + $0x10] sm:$0xff]   ;;  %v1077_v16 = vmov 0   ;;  %vm431_vm0 = vcmask 130112  }
   0xa   :  { %v979_v7 = vld [vmem:[%s1360_s3 + $0x8] sm:$0xff]   ;;  %v980_v8 = vld [vmem:[%s1360_s3] sm:$0xff]   ;;  %v1165_v10 = vld [vmem:[%s1357_s0 + $0x10] sm:$0xff]   ;;  %972 = vset.pattern.permute.xlu0 %v1077_v16  ;;  %vm496_vm1 = vcmask 1041409   ;;  %vm498_vm2 = vcmask 1042434   ;;  %vm500_vm3 = vcmask 1043459  }
   0xb   :  { %905 = vmatpush3.bf16.msra.mxu0 %v975_v2  ;;  %v1160_v9 = vld [vmem:[%s1357_s0 + $0x8] sm:$0xff]   ;;  %v1172_v11 = vld [vmem:[%s1357_s0 + $0x18] sm:$0xff]   ;;  %v1177_v12 = vld [vmem:[%s1357_s0 + $0x20] sm:$0xff]   ;;  %vm502_vm4 = vcmask 1044484   ;;  %vm504_vm5 = vcmask 1045509   ;;  %vm506_vm6 = vcmask 1046534  }
   0xc   :  { %906 = vmatprep.subr.bf16.mxu0 %v976_v3  ;;  %v1184_v13 = vld [vmem:[%s1357_s0 + $0x28] sm:$0xff]   ;;  %v1189_v14 = vld [vmem:[%s1357_s0 + $0x30] sm:$0xff]   ;;  %v1196_v15 = vld [vmem:[%s1357_s0 + $0x38] sm:$0xff]   ;;  %vm508_vm7 = vcmask 1047559   ;;  %vm513_vm9 = vcmask 130048   ;;  %vm1079_vm10 = vmmov 0  }
   0xd   :  { %v858_v17 = vld [vmem:[%s1358_s1 + $0x1] ss:$0 sm:$0xff]  ;;  %v857_v19 = vld [vmem:[%s1358_s1] ss:$0 sm:$0xff]  ;;  %v860_v26 = vld [vmem:[%s1358_s1 + $0x3] ss:$0 sm:$0xff] }
   0xe   :  { %v859_v29 = vld [vmem:[%s1358_s1 + $0x2] ss:$0 sm:$0xff]  ;;  %v862_v36 = vld [vmem:[%s1358_s1 + $0x5] ss:$0 sm:$0xff]  ;;  %v1217_v37 = vld [vmem:[%s1361_s4] ss:$0 sm:$0xff] }
   0xf   :  { %907 = vmatpush3.bf16.msra.mxu0 %v976_v3  ;;  %v861_v41 = vld [vmem:[%s1358_s1 + $0x4] ss:$0 sm:$0xff]  ;;  %v864_v54 = vld [vmem:[%s1358_s1 + $0x7] ss:$0 sm:$0xff]  ;;  %v863_v59 = vld [vmem:[%s1358_s1 + $0x6] ss:$0 sm:$0xff] }
  0x10   :  { %908 = vmatprep.subr.bf16.mxu0 %v977_v5 }
  0x13   :  { %909 = vmatpush3.bf16.msra.mxu0 %v977_v5 }
  0x14   :  { %910 = vmatprep.subr.bf16.mxu0 %v978_v6 }
  0x17   :  { %911 = vmatpush3.bf16.msra.mxu0 %v978_v6 }
  0x18   :  { %912 = vmatprep.subr.bf16.mxu0 %v979_v7 }
  0x1b   :  { %913 = vmatpush3.bf16.msra.mxu0 %v979_v7 }
  0x1c   :  { %914 = vmatprep.subr.bf16.mxu0 %v980_v8 }
  0x1f   :  { %915 = vmatpush3.bf16.msra.mxu0 %v980_v8 }
  0x22   :  { %917 = vmatmul.mubr.bf16.vlgmr.msra.gmra.mxu0 %v1160_v9 }
  0x23   :  { %920 = vmatprep.mubr.bf16.mxu0 %v1165_v10 }
  0x2a   :  { %921 = vmatmul.mubr.bf16.gmra.mxu0 %v1172_v11 }
  0x2b   :  { %924 = vmatprep.mubr.bf16.mxu0 %v1177_v12 }
  0x32   :  { %925 = vmatmul.mubr.bf16.gmra.mxu0 %v1184_v13 }
  0x33   :  { %928 = vmatprep.mubr.bf16.mxu0 %v1189_v14 }
  0x3a   :  { %929 = vmatmul.mubr.bf16.gmra.mxu0 %v1196_v15 }
  0xe2   :  { %v918_v18 = vpop.f32.mrf.mxu0 }
  0xe3   :  { %v314_v20 = vadd.f32 %v918_v18, %v858_v17 }
  0xe4   :  { %v193_v21 = vpop.f32.mrf.mxu0 }
  0xe5   :  { %997 = vtanh.f32 %v314_v20  ;;  %v312_v22 = vadd.f32 %v857_v19, %v193_v21 }
  0xe6   :  { %v919_v23 = vpop.f32.mrf.mxu0 }
  0xe7   :  { %999 = vtanh.f32 %v312_v22  ;;  %v315_v24 = vadd.f32 %v919_v23, %v858_v17 }
  0xe8   :  { %v196_v25 = vpop.f32.mrf.mxu0 }
  0xe9   :  { %1001 = vtanh.f32 %v315_v24  ;;  %v313_v27 = vadd.f32 %v857_v19, %v196_v25 }
  0xea   :  { %v922_v28 = vpop.f32.mrf.mxu0 }
  0xeb   :  { %1003 = vtanh.f32 %v313_v27  ;;  %v318_v30 = vadd.f32 %v922_v28, %v860_v26 }
  0xec   :  { %v209_v31 = vpop.f32.mrf.mxu0 }
  0xed   :  { %1005 = vtanh.f32 %v318_v30  ;;  %v316_v32 = vadd.f32 %v859_v29, %v209_v31 }
  0xee   :  { %v923_v33 = vpop.f32.mrf.mxu0 }
  0xef   :  { %v319_v34 = vadd.f32 %v923_v33, %v860_v26  ;;  %1007 = vtanh.f32 %v316_v32 }
  0xf0   :  { %v212_v35 = vpop.f32.mrf.mxu0 }
  0xf1   :  { %1009 = vtanh.f32 %v319_v34  ;;  %v317_v38 = vadd.f32 %v859_v29, %v212_v35  ;;  %v401_v34 = vld [vmem:[%s1359_s2] sm:$0xff] }
  0xf2   :  { %v998_v39 = vpop.eup %997  ;;  %v926_v40 = vpop.f32.mrf.mxu0 }
  0xf3   :  { %1011 = vtanh.f32 %v317_v38  ;;  %v322_v42 = vadd.f32 %v926_v40, %v862_v36  ;;  %v353_v43 = vmul.f32 %v998_v39, %v1217_v37  ;;  %v399_v40 = vlaneseq }
  0xf4   :  { %v1000_v44 = vpop.eup %999  ;;  %v225_v45 = vpop.f32.mrf.mxu0 }
  0xf5   :  { %1013 = vtanh.f32 %v322_v42  ;;  %v320_v46 = vadd.f32 %v861_v41, %v225_v45  ;;  %371 = vadd.xlane.f32.xlu1 %v353_v43  ;;  %v351_v47 = vmul.f32 %v1000_v44, %v1217_v37  ;;  %v400_v43 = vand.u32 127, %v399_v40 }
  0xf6   :  { %v1002_v48 = vpop.eup %1001  ;;  %v927_v49 = vpop.f32.mrf.mxu0 }
  0xf7   :  { %v323_v50 = vadd.f32 %v927_v49, %v862_v36  ;;  %367 = vadd.xlane.f32.xlu0 %v351_v47  ;;  %v354_v51 = vmul.f32 %v1002_v48, %v1217_v37  ;;  %1015 = vtanh.f32 %v320_v46  ;;  %v426_v45 = vadd.s32 4294967288, %v400_v43 }
  0xf8   :  { %v1004_v52 = vpop.eup %1003  ;;  %v228_v53 = vpop.f32.mrf.mxu0  ;;  %v1247_v47 = vshrl.u32 %v399_v40, 7 }
  0xf9   :  { %1017 = vtanh.f32 %v323_v50  ;;  %v321_v55 = vadd.f32 %v861_v41, %v228_v53  ;;  %373 = vadd.xlane.f32.xlu1 %v354_v51  ;;  %v352_v56 = vmul.f32 %v1004_v52, %v1217_v37 }
  0xfa   :  { %v1006_v57 = vpop.eup %1005  ;;  %v930_v58 = vpop.f32.mrf.mxu0  ;;  %v429_v48 = vsub.s32 %v426_v45, %v1247_v47  ;;  %v424_v50 = vsub.s32 %v400_v43, %v1247_v47 }
  0xfb   :  { %1019 = vtanh.f32 %v321_v55  ;;  %v326_v60 = vadd.f32 %v930_v58, %v864_v54  ;;  %369 = vadd.xlane.f32.xlu0 %v352_v56  ;;  %v357_v61 = vmul.f32 %v1006_v57, %v1217_v37 }
  0xfc   :  { %v241_v62 = vpop.f32.mrf.mxu0  ;;  %v1008_v63 = vpop.eup %1007 }
  0xfd   :  { %1021 = vtanh.f32 %v326_v60  ;;  %v324_v0 = vadd.f32 %v863_v59, %v241_v62  ;;  %v355_v16 = vmul.f32 %v1008_v63, %v1217_v37 }
  0xfe   :  { %v1010_v1 = vpop.eup %1009  ;;  %v931_v2 = vpop.f32.mrf.mxu0 }
  0xff   :  { %379 = vadd.xlane.f32.xlu0 %v357_v61  ;;  %v358_v3 = vmul.f32 %v1010_v1, %v1217_v37  ;;  %1023 = vtanh.f32 %v324_v0  ;;  %v327_v7 = vadd.f32 %v931_v2, %v864_v54 }
 0x100   :  { %v1012_v5 = vpop.eup %1011  ;;  %v244_v6 = vpop.f32.mrf.mxu0 }
 0x101   :  { %v325_v8 = vadd.f32 %v863_v59, %v244_v6  ;;  %381 = vadd.xlane.f32.xlu1 %v358_v3  ;;  %v356_v18 = vmul.f32 %v1012_v5, %v1217_v37 }
 0x102   :  { %v1014_v17 = vpop.eup %1013 }
 0x103   :  { %1025 = vtanh.f32 %v325_v8  ;;  %375 = vadd.xlane.f32.xlu0 %v355_v16  ;;  %v361_v19 = vmul.f32 %v1014_v17, %v1217_v37 }
 0x104   :  { %v1016_v20 = vpop.eup %1015  ;;  %1027 = vtanh.f32 %v327_v7 }
 0x105   :  { %377 = vadd.xlane.f32.xlu1 %v356_v18  ;;  %v359_v24 = vmul.f32 %v1016_v20, %v1217_v37 }
 0x106   :  { %v1018_v21 = vpop.eup %1017 }
 0x107   :  { %387 = vadd.xlane.f32.xlu0 %v361_v19  ;;  %v362_v22 = vmul.f32 %v1018_v21, %v1217_v37 }
 0x108   :  { %v1020_v23 = vpop.eup %1019 }
 0x109   :  { %389 = vadd.xlane.f32.xlu1 %v362_v22  ;;  %v360_v26 = vmul.f32 %v1020_v23, %v1217_v37 }
 0x10a   :  { %v1022_v25 = vpop.eup %1021 }
 0x10b   :  { %383 = vadd.xlane.f32.xlu0 %v359_v24  ;;  %v365_v27 = vmul.f32 %v1022_v25, %v1217_v37 }
 0x10c   :  { %v1024_v28 = vpop.eup %1023 }
 0x10d   :  { %385 = vadd.xlane.f32.xlu1 %v360_v26  ;;  %v363_v30 = vmul.f32 %v1024_v28, %v1217_v37 }
 0x10f   :  { %395 = vadd.xlane.f32.xlu0 %v365_v27 }
 0x110   :  { %v1026_v29 = vpop.eup %1025 }
 0x111   :  { %v364_v31 = vmul.f32 %v1026_v29, %v1217_v37  ;;  %v1028_v32 = vpop.eup %1027 }
 0x112   :  { %v366_v33 = vmul.f32 %v1028_v32, %v1217_v37 }
 0x113   :  { %391 = vadd.xlane.f32.xlu0 %v363_v30  ;;  %393 = vadd.xlane.f32.xlu1 %v364_v31 }
 0x117   :  { %397 = vadd.xlane.f32.xlu1 %v366_v33 }
 0x129   :  { %403 = vperm.xlu0 %972, %v401_v34  }
 0x17e   :  { %v372_v35 = vpop.xlane.xlu1 %371 }
 0x17f   :  { %v436_v58 = vrot.slane %v372_v35, %v424_v50 }
 0x180   :  { %v368_v36 = vpop.xlane.xlu0 %367 }
 0x181   :  { %v425_v54 = vrot.slane %v368_v36, %v424_v50 }
 0x182   :  { %v374_v39 = vpop.xlane.xlu1 %373 }
 0x183   :  { %v440_v55 = vrot.slane %v374_v39, %v429_v48 }
 0x184   :  { %v370_v38 = vpop.xlane.xlu0 %369 }
 0x185   :  { %v430_v51 = vrot.slane %v370_v38, %v429_v48  ;;  %v441_v63 = vsel %vm431_vm0, %v440_v55, %v436_v58  ;;  %v610_v55 = vsub.s32 6, %v1247_v47  ;;  %v566_v58 = vsub.s32 2, %v1247_v47 }
 0x187   :  { %v432_v59 = vsel %vm431_vm0, %v430_v51, %v425_v54  ;;  %v599_v51 = vsub.s32 5, %v1247_v47 }
 0x188   :  { %v380_v41 = vpop.xlane.xlu0 %379  ;;  %v497_v1 = vsel %vm496_vm1, %v441_v63, %v432_v59  ;;  %v1078_v59 = vmov 0.0   ;;  %v716_v63 = vld [vmem:[%s1362_s5 + $0x70] sm:$0xff] }
 0x189   :  { %v454_v3 = vrot.slane %v380_v41, %v424_v50  ;;  %932 = vmatprep.subr.mxu1 %v1078_v59  ;;  %964 = vmatprep.mubr.msk.f32.mxu1 %vm1079_vm10, %v1078_v59 }
 0x18a   :  { %v382_v42 = vpop.xlane.xlu1 %381 }
 0x18b   :  { %v458_v0 = vrot.slane %v382_v42, %v429_v48 }
 0x18c   :  { %v376_v44 = vpop.xlane.xlu0 %375 }
 0x18d   :  { %v445_v56 = vrot.slane %v376_v44, %v424_v50  ;;  %v459_v16 = vsel %vm431_vm0, %v458_v0, %v454_v3  ;;  %v577_v44 = vsub.s32 3, %v1247_v47  ;;  %v714_v0 = vld [vmem:[%s1362_s5 + $0x60] sm:$0xff]  ;;  %v711_v3 = vld [vmem:[%s1362_s5 + $0x48] sm:$0xff] }
 0x18e   :  { %v378_v46 = vpop.xlane.xlu1 %377 }
 0x18f   :  { %v449_v52 = vrot.slane %v378_v46, %v429_v48 }
 0x190   :  { %v388_v37 = vpop.xlane.xlu0 %387 }
 0x191   :  { %v450_v60 = vsel %vm431_vm0, %v449_v52, %v445_v56  ;;  %v472_v21 = vrot.slane %v388_v37, %v424_v50  ;;  %v555_v52 = vsub.s32 1, %v1247_v47 }
 0x192   :  { %v390_v49 = vpop.xlane.xlu1 %389  ;;  %v499_v5 = vsel %vm498_vm2, %v450_v60, %v497_v1  ;;  %v717_v60 = vld [vmem:[%s1362_s5 + $0x78] sm:$0xff] }
 0x193   :  { %v476_v17 = vrot.slane %v390_v49, %v429_v48  ;;  %v501_v20 = vsel %vm500_vm3, %v459_v16, %v499_v5  ;;  %v588_v49 = vsub.s32 4, %v1247_v47  ;;  %933 = vmatpush3.msra.mxu1 %v717_v60  ;;  %v713_v1 = vld [vmem:[%s1362_s5 + $0x58] sm:$0xff]  ;;  %v710_v5 = vld [vmem:[%s1362_s5 + $0x40] sm:$0xff] }
 0x194   :  { %v384_v53 = vpop.xlane.xlu0 %383  ;;  %934 = vmatprep.subr.mxu1 %v1078_v59  ;;  %v706_v16 = vld [vmem:[%s1362_s5 + $0x20] sm:$0xff] }
 0x195   :  { %v463_v2 = vrot.slane %v384_v53, %v424_v50  ;;  %v477_v25 = vsel %vm431_vm0, %v476_v17, %v472_v21  ;;  %935 = vmatpush3.msra.mxu1 %v716_v63  ;;  %v705_v17 = vld [vmem:[%s1362_s5 + $0x18] sm:$0xff]  ;;  %v538_v63 = vunpack.c.l.bf16 %v1189_v14 }
 0x196   :  { %v386_v57 = vpop.xlane.xlu1 %385  ;;  %936 = vmatprep.subr.mxu1 %v1078_v59 }
 0x197   :  { %v467_v61 = vrot.slane %v386_v57, %v429_v48  ;;  %v621_v57 = vsub.s32 7, %v1247_v47 }
 0x198   :  { %v396_v62 = vpop.xlane.xlu0 %395 }
 0x199   :  { %v468_v6 = vsel %vm431_vm0, %v467_v61, %v463_v2  ;;  %v490_v26 = vrot.slane %v396_v62, %v424_v50  ;;  %v712_v2 = vld [vmem:[%s1362_s5 + $0x50] sm:$0xff] }
 0x19a   :  { %v503_v22 = vsel %vm502_vm4, %v468_v6, %v501_v20  ;;  %v709_v6 = vld [vmem:[%s1362_s5 + $0x38] sm:$0xff]  ;;  %v702_v20 = vld [vmem:[%s1362_s5] sm:$0xff] }
 0x19b   :  { %v505_v28 = vsel %vm504_vm5, %v477_v25, %v503_v22 }
 0x19c   :  { %v392_v7 = vpop.xlane.xlu0 %391  ;;  %v394_v8 = vpop.xlane.xlu1 %393 }
 0x19d   :  { %v481_v18 = vrot.slane %v392_v7, %v424_v50  ;;  %v485_v19 = vrot.slane %v394_v8, %v429_v48  ;;  %v708_v7 = vld [vmem:[%s1362_s5 + $0x30] sm:$0xff]  ;;  %v707_v8 = vld [vmem:[%s1362_s5 + $0x28] sm:$0xff] }
 0x19f   :  { %v486_v23 = vsel %vm431_vm0, %v485_v19, %v481_v18  ;;  %v704_v18 = vld [vmem:[%s1362_s5 + $0x10] sm:$0xff]  ;;  %v703_v19 = vld [vmem:[%s1362_s5 + $0x8] sm:$0xff] }
 0x1a0   :  { %v398_v24 = vpop.xlane.xlu1 %397  ;;  %v507_v30 = vsel %vm506_vm6, %v486_v23, %v505_v28 }
 0x1a1   :  { %v494_v27 = vrot.slane %v398_v24, %v429_v48 }
 0x1a3   :  { %v495_v29 = vsel %vm431_vm0, %v494_v27, %v490_v26  ;;  %v529_v26 = vunpack.c.h.bf16 %v1160_v9  ;;  %v527_v27 = vunpack.c.h.bf16 %v1142_v4 }
 0x1a4   :  { %v404_v31 = vpop.permute.xlu0 %403  ;;  %v509_v32 = vsel %vm508_vm7, %v495_v29, %v507_v30  ;;  %v528_v29 = vunpack.c.l.bf16 %v1160_v9  ;;  %v531_v30 = vunpack.c.h.bf16 %v1165_v10 }
 0x1a5   :  { %vm405_vm8 = vcmp.lt.s32.totalorder %v400_v43, %v404_v31  ;;  %v544_v43 = vsub.s32 0, %v1247_v47  ;;  %v715_v47 = vld [vmem:[%s1362_s5 + $0x68] sm:$0xff]  ;;  %v526_v31 = vunpack.c.l.bf16 %v1142_v4  ;;  %v534_v4 = vunpack.c.l.bf16 %v1177_v12  ;;  %s1080_s5 = smov [#allocation4]  }
 0x1a6   :  { %v511_v33 = vsel %vm405_vm8, %v509_v32, -1e+15  ;;  %937 = vmatpush3.msra.mxu1 %v715_v47  ;;  %v530_v32 = vunpack.c.l.bf16 %v1165_v10  ;;  %s829_s12 = sshll.u32 %s1080_s5, 4  ;;  %s830_s12 = int_to_ptr.vmem [resolvable:$true] %s829_s12 }
 0x1a7   :  { %v512_v34 = vmul.f32 2.0, %v511_v33  ;;  %938 = vmatprep.subr.mxu1 %v1078_v59  ;;  %s1033_s13 = scalar_lea.vmem %s830_s12, 128  ;;  %p1038_p1 = scmp.lt.s32.totalorder %s830_s12, %s830_s12 }
 0x1a8   :  { %939 = vmatpush3.msra.mxu1 %v714_v0  ;;  %v539_v0 = vunpack.c.h.bf16 %v1189_v14  ;;  %p1034_p0 = scmp.ne.s32.totalorder %s830_s12, %s1033_s13  ;;  %p1039_p2 = scmp.lt.s32.totalorder %s1033_s13, %s1033_s13 }
 0x1a9   :  { %v514_v35 = vsel %vm513_vm9, %v512_v34, -inf  ;;  %940 = vmatprep.subr.mxu1 %v1078_v59 }
 0x1aa   :  { %515 = vmax.xlane.f32.xlu1 %v514_v35  ;;  %941 = vmatpush3.msra.mxu1 %v713_v1  ;;  %p1040_p3 = por %p1039_p2, %p1038_p1 }
 0x1ab   :  { %942 = vmatprep.subr.mxu1 %v1078_v59 }
 0x1ac   :  { %943 = vmatpush3.msra.mxu1 %v712_v2  ;;  %p1041_p4 = pnand %p1040_p3, %p1034_p0 }
 0x1ad   :  { %944 = vmatprep.subr.mxu1 %v1078_v59 }
 0x1ae   :  { %945 = vmatpush3.msra.mxu1 %v711_v3 }
 0x1af   :  { %946 = vmatprep.subr.mxu1 %v1078_v59 }
 0x1b0   :  { %947 = vmatpush3.msra.mxu1 %v710_v5 }
 0x1b1   :  { %948 = vmatprep.subr.mxu1 %v1078_v59 }
 0x1b2   :  { %949 = vmatpush3.msra.mxu1 %v709_v6 }
 0x1b3   :  { %950 = vmatprep.subr.mxu1 %v1078_v59 }
 0x1b4   :  { %951 = vmatpush3.msra.mxu1 %v708_v7 }
 0x1b5   :  { %952 = vmatprep.subr.mxu1 %v1078_v59 }
 0x1b6   :  { %953 = vmatpush3.msra.mxu1 %v707_v8 }
 0x1b7   :  { %954 = vmatprep.subr.mxu1 %v1078_v59 }
 0x1b8   :  { %955 = vmatpush3.msra.mxu1 %v706_v16 }
 0x1b9   :  { %956 = vmatprep.subr.mxu1 %v1078_v59 }
 0x1ba   :  { %957 = vmatpush3.msra.mxu1 %v705_v17 }
 0x1bb   :  { %958 = vmatprep.subr.mxu1 %v1078_v59 }
 0x1bc   :  { %959 = vmatpush3.msra.mxu1 %v704_v18 }
 0x1bd   :  { %960 = vmatprep.subr.mxu1 %v1078_v59 }
 0x1be   :  { %961 = vmatpush3.msra.mxu1 %v703_v19  ;;  %v541_v19 = vunpack.c.h.bf16 %v1196_v15 }
 0x1bf   :  { %962 = vmatprep.subr.mxu1 %v1078_v59 }
 0x1c0   :  { %963 = vmatpush3.msra.mxu1 %v702_v20 }
 0x233   :  { %v516_v36 = vpop.xlane.xlu1 %515 }
 0x234   :  { %v517_v38 = vsub.f32 %v512_v34, %v516_v36 }
 0x236   :  { %v518_v39 = vmul.f32 1.442695, %v517_v38  ;;  %v532_v38 = vunpack.c.l.bf16 %v1172_v11 }
 0x238   :  { %1029 = vpow2.f32 %v518_v39 }
 0x245   :  { %v1030_v40 = vpop.eup %1029 }
 0x246   :  { %v520_v41 = vsel %vm513_vm9, %v1030_v40, 0.0 }
 0x247   :  { %521 = vadd.xlane.f32.xlu1 %v520_v41  ;;  %v533_v41 = vunpack.c.h.bf16 %v1172_v11 }
 0x2d0   :  { %v522_v42 = vpop.xlane.xlu1 %521 }
 0x2d1   :  { %1031 = vrcp.f32 %v522_v42 }
 0x2de   :  { %v1032_v45 = vpop.eup %1031 }
 0x2df   :  { %v524_v46 = vmul.f32 %v1032_v45, %v1030_v40 }
 0x2e1   :  { %525 = vst.msk [vmem:[#allocation4] sm:$0xff] %vm513_vm9, %v524_v46  ;;  %v578_v37 = vrot.slane %v524_v46, %v577_v44  ;;  %v545_v48 = vrot.slane %v524_v46, %v544_v43  ;;  %v589_v50 = vrot.slane %v524_v46, %v588_v49  ;;  %v600_v53 = vrot.slane %v524_v46, %v599_v51 }
 0x2e2   :  { %v556_v54 = vrot.slane %v524_v46, %v555_v52  ;;  %v611_v56 = vrot.slane %v524_v46, %v610_v55  ;;  %v622_v61 = vrot.slane %v524_v46, %v621_v57  ;;  %v567_v62 = vrot.slane %v524_v46, %v566_v58 }
 0x2e3   :  { %580 = vbcast.lane.b32.xlu0 %v578_v37, 256  ;;  %547 = vbcast.lane.b32.xlu1 %v545_v48, 256  ;;  %v535_v49 = vunpack.c.h.bf16 %v1177_v12  ;;  %v537_v58 = vunpack.c.h.bf16 %v1184_v13 }
 0x2e7   :  { %591 = vbcast.lane.b32.xlu0 %v589_v50, 256  ;;  %551 = vbcast.lane.b32.xlu1 %v545_v48, 264 }
 0x2eb   :  { %602 = vbcast.lane.b32.xlu0 %v600_v53, 256  ;;  %558 = vbcast.lane.b32.xlu1 %v556_v54, 256 }
 0x2ef   :  { %613 = vbcast.lane.b32.xlu0 %v611_v56, 256  ;;  %562 = vbcast.lane.b32.xlu1 %v556_v54, 264 }
 0x2f3   :  { %624 = vbcast.lane.b32.xlu0 %v622_v61, 256  ;;  %569 = vbcast.lane.b32.xlu1 %v567_v62, 256 }
 0x2f7   :  { %573 = vbcast.lane.b32.xlu1 %v567_v62, 264 }
 0x2fb   :  { %584 = vbcast.lane.b32.xlu1 %v578_v37, 264 }
 0x2ff   :  { %595 = vbcast.lane.b32.xlu1 %v589_v50, 264 }
 0x303   :  { %606 = vbcast.lane.b32.xlu1 %v600_v53, 264  ;;  %v536_v53 = vunpack.c.l.bf16 %v1184_v13  ;;  %v540_v13 = vunpack.c.l.bf16 %v1196_v15 }
 0x307   :  { %617 = vbcast.lane.b32.xlu1 %v611_v56, 264 }
 0x30b   :  { %628 = vbcast.lane.b32.xlu1 %v622_v61, 264 }
 0x355   :  { %v548_v21 = vpop.permute.xlu1 %547  ;;  %v581_v25 = vpop.permute.xlu0 %580 }
 0x356   :  { %v630_v42 = vmul.f32 %v548_v21, %v526_v31  ;;  %v636_v37 = vmul.f32 %v581_v25, %v532_v38 }
 0x359   :  { %v552_v22 = vpop.permute.xlu1 %551  ;;  %v592_v33 = vpop.permute.xlu0 %591 }
 0x35a   :  { %v631_v35 = vmul.f32 %v552_v22, %v527_v27  ;;  %v638_v55 = vmul.f32 %v592_v33, %v534_v4 }
 0x35c   :  { %v646_v9 = vadd.f32 %v631_v35, %v630_v42 }
 0x35d   :  { %v559_v23 = vpop.permute.xlu1 %558  ;;  %v603_v10 = vpop.permute.xlu0 %602 }
 0x35e   :  { %v632_v39 = vmul.f32 %v559_v23, %v528_v29  ;;  %v647_v52 = vrot.slane %v646_v9, 4  ;;  %v640_v1 = vmul.f32 %v603_v10, %v536_v53 }
 0x360   :  { %v648_v62 = vadd.f32 %v647_v52, %v646_v9 }
 0x361   :  { %v563_v24 = vpop.permute.xlu1 %562  ;;  %v614_v59 = vpop.permute.xlu0 %613 }
 0x362   :  { %v633_v34 = vmul.f32 %v563_v24, %v529_v26  ;;  %v649_v16 = vrot.slane %v648_v62, 2  ;;  %v642_v20 = vmul.f32 %v614_v59, %v538_v63 }
 0x364   :  { %v653_v43 = vadd.f32 %v633_v34, %v632_v39 }
 0x365   :  { %v570_v28 = vpop.permute.xlu1 %569  ;;  %v625_v21 = vpop.permute.xlu0 %624 }
 0x366   :  { %v634_v44 = vmul.f32 %v570_v28, %v530_v32  ;;  %v654_v50 = vrot.slane %v653_v43, 4  ;;  %v650_v28 = vadd.f32 %v649_v16, %v648_v62  ;;  %v644_v29 = vmul.f32 %v625_v21, %v540_v13 }
 0x368   :  { %v655_v60 = vadd.f32 %v654_v50, %v653_v43  ;;  %v651_v42 = vrot.slane %v650_v28, 1 }
 0x369   :  { %v574_v36 = vpop.permute.xlu1 %573 }
 0x36a   :  { %v635_v40 = vmul.f32 %v574_v36, %v531_v30  ;;  %v656_v6 = vrot.slane %v655_v60, 2 }
 0x36c   :  { %v660_v45 = vadd.f32 %v635_v40, %v634_v44  ;;  %v657_v25 = vadd.f32 %v656_v6, %v655_v60 }
 0x36d   :  { %v585_v46 = vpop.permute.xlu1 %584 }
 0x36e   :  { %v637_v48 = vmul.f32 %v585_v46, %v533_v41  ;;  %v661_v54 = vrot.slane %v660_v45, 4  ;;  %v658_v38 = vrot.slane %v657_v25, 1 }
 0x370   :  { %v667_v51 = vadd.f32 %v637_v48, %v636_v37  ;;  %v662_v47 = vadd.f32 %v661_v54, %v660_v45  ;;  %v659_v46 = vadd.f32 %v658_v38, %v657_v25 }
 0x371   :  { %v596_v11 = vpop.permute.xlu1 %595 }
 0x372   :  { %v668_v56 = vrot.slane %v667_v51, 4  ;;  %v639_v57 = vmul.f32 %v596_v11, %v535_v49  ;;  %v663_v17 = vrot.slane %v662_v47, 2  ;;  %v652_v49 = vadd.f32 %v651_v42, %v650_v28 }
 0x374   :  { %v674_v61 = vadd.f32 %v639_v57, %v638_v55  ;;  %v669_v2 = vadd.f32 %v668_v56, %v667_v51  ;;  %v664_v30 = vadd.f32 %v663_v17, %v662_v47  ;;  %v733_v54 = vsel %vm496_vm1, %v659_v46, %v652_v49 }
 0x375   :  { %v607_v12 = vpop.permute.xlu1 %606 }
 0x376   :  { %v675_v3 = vrot.slane %v674_v61, 4  ;;  %v641_v5 = vmul.f32 %v607_v12, %v537_v58  ;;  %v670_v22 = vrot.slane %v669_v2, 2  ;;  %v665_v41 = vrot.slane %v664_v30, 1 }
 0x378   :  { %v676_v7 = vadd.f32 %v675_v3, %v674_v61  ;;  %v681_v8 = vadd.f32 %v641_v5, %v640_v1  ;;  %v671_v32 = vadd.f32 %v670_v22, %v669_v2  ;;  %v666_v48 = vadd.f32 %v665_v41, %v664_v30 }
 0x379   :  { %v618_v18 = vpop.permute.xlu1 %617 }
 0x37a   :  { %v682_v23 = vrot.slane %v681_v8, 4  ;;  %v643_v24 = vmul.f32 %v618_v18, %v539_v0  ;;  %v677_v14 = vrot.slane %v676_v7, 2  ;;  %v672_v44 = vrot.slane %v671_v32, 1 }
 0x37b   :  { %v734_v57 = vsel %vm498_vm2, %v666_v48, %v733_v54 }
 0x37c   :  { %v683_v26 = vadd.f32 %v682_v23, %v681_v8  ;;  %v688_v27 = vadd.f32 %v643_v24, %v642_v20  ;;  %v678_v36 = vadd.f32 %v677_v14, %v676_v7  ;;  %v673_v50 = vadd.f32 %v672_v44, %v671_v32 }
 0x37d   :  { %v629_v31 = vpop.permute.xlu1 %628 }
 0x37e   :  { %v684_v33 = vrot.slane %v683_v26, 2  ;;  %v689_v34 = vrot.slane %v688_v27, 4  ;;  %v645_v35 = vmul.f32 %v629_v31, %v541_v19  ;;  %v679_v45 = vrot.slane %v678_v36, 1 }
 0x37f   :  { %v735_v59 = vsel %vm500_vm3, %v673_v50, %v734_v57 }
 0x380   :  { %v685_v15 = vadd.f32 %v684_v33, %v683_v26  ;;  %v690_v39 = vadd.f32 %v689_v34, %v688_v27  ;;  %v695_v40 = vadd.f32 %v645_v35, %v644_v29  ;;  %v680_v53 = vadd.f32 %v679_v45, %v678_v36 }
 0x382   :  { %v691_v43 = vrot.slane %v690_v39, 2  ;;  %v696_v9 = vrot.slane %v695_v40, 4  ;;  %v686_v37 = vrot.slane %v685_v15, 1  ;;  %v736_v60 = vsel %vm502_vm4, %v680_v53, %v735_v59 }
 0x384   :  { %v692_v4 = vadd.f32 %v691_v43, %v690_v39  ;;  %v697_v10 = vadd.f32 %v696_v9, %v695_v40  ;;  %v687_v11 = vadd.f32 %v686_v37, %v685_v15 }
 0x386   :  { %v693_v51 = vrot.slane %v692_v4, 1  ;;  %v698_v52 = vrot.slane %v697_v10, 2  ;;  %v737_v62 = vsel %vm504_vm5, %v687_v11, %v736_v60 }
 0x388   :  { %v699_v55 = vadd.f32 %v698_v52, %v697_v10  ;;  %v694_v56 = vadd.f32 %v693_v51, %v692_v4 }
 0x38a   :  { %v700_v58 = vrot.slane %v699_v55, 1  ;;  %v738_v63 = vsel %vm506_vm6, %v694_v56, %v737_v62 }
 0x38c   :  { %v701_v61 = vadd.f32 %v700_v58, %v699_v55 }
 0x38e   :  { %v739_v47 = vsel %vm508_vm7, %v701_v61, %v738_v63 }
 0x38f   :  { %965 = vmatmul.mubr.f32.vlgmr.msra.gmra.mxu1 %v739_v47 }
 0x390   :  { %1044 = shalt.err (!%p1041_p4)
}
 0x391   :  { %832 = dma.vmem_to_hbm [thread:$0]  %s830_s12, 128, %s1365_s8, [#allocation5]   ;;  %v866_v12 = vld [vmem:[%s1363_s6] ss:$0 sm:$0xff]  ;;  %vm811_vm11 = vcmask 195584  }
 0x392   :  { %s1081_s0 = smov [#allocation2]  }
 0x393   :  { %s819_s18 = sshll.u32 %s1081_s0, 4  ;;  %s820_s18 = int_to_ptr.vmem [resolvable:$true] %s819_s18 }
 0x394   :  { %s1053_s19 = scalar_lea.vmem %s820_s18, 128  ;;  %p1058_p6 = scmp.lt.s32.totalorder %s820_s18, %s820_s18 }
 0x395   :  { %p1054_p5 = scmp.ne.s32.totalorder %s820_s18, %s1053_s19  ;;  %p1059_p7 = scmp.lt.s32.totalorder %s1053_s19, %s1053_s19 }
 0x397   :  { %p1060_p8 = por %p1059_p7, %p1058_p6 }
 0x399   :  { %p1061_p9 = pnand %p1060_p8, %p1054_p5 }
 0x44f   :  { %v807_v0 = vpop.f32.mrf.mxu1 }
 0x450   :  { %v808_v1 = vadd.f32 %v866_v12, %v807_v0 }
 0x451   :  { %v966_v2 = vpop.f32.mrf.mxu1 }
 0x452   :  { %812 = vst.msk [vmem:[#allocation2] sm:$0xff] %vm811_vm11, %v808_v1 }
 0x453   :  { %1064 = shalt.err (!%p1061_p9)
}
 0x454   :  { %822 = dma.vmem_to_hbm [thread:$0]  %s820_s18, 128, %s1364_s7, [#allocation3]  }
 0x455   :  { %1073 = dma.done.wait [#allocation3], 128  }
 0x456   :  { %1074 = vsyncadd [#allocation3], 4294967168 }
 0x457   :  { %1075 = dma.done.wait [#allocation5], 128  }
 0x458   :  { %1076 = vsyncadd [#allocation5], 4294967168 }
 0x459   :  { %839 = vsyncpa [#allocation3], 1 }
 0x45a   :  { %840 = vsyncpa [#allocation5], 1 }

</bundles_post_ra>
